<compile_context>
chip_gen: v7x
topology: tpu7x:2x2x1
jax: 0.10.0
libtpu: 0.0.40
codegen_flags: <defaults>
</compile_context>

<pallas_src>
import math
import functools

import jax
import jax.numpy as jnp
from jax.experimental import pallas as pl
from jax.experimental.pallas import tpu as pltpu


def _attn_kernel(x_ref, w_attn_ref, b_attn_ref, w_proj_ref, b_proj_ref, o_ref,
                 *, n_head: int):
    blk_b, T, C = x_ref.shape
    D = C // n_head
    R = blk_b * T                 # rows processed by this grid step
    G = blk_b * n_head            # independent (batch*head) attention problems
    scale = 1.0 / math.sqrt(D)

    x = x_ref[...].reshape(R, C)                        # merge leading dims

    # Fused QKV projection: one (R, C) @ (C, 3C) MXU call for the whole block.
    qkv = jnp.dot(x, w_attn_ref[...], preferred_element_type=jnp.float32)
    qkv = qkv + b_attn_ref[...]                         # (R, 3C) + (1, 3C)

    def split_heads(m):                                 # (R, C) -> (G, T, D)
        m = m.reshape(R, n_head, D)                     # split lane dim
        m = pltpu.einshape("rhd->hrd", m)               # layout-aware transpose
        return m.reshape(G, T, D)                       # (H, blk_b*T, D)->(H*blk_b, T, D)

    q = split_heads(qkv[:, 0 * C:1 * C]) * scale
    k = split_heads(qkv[:, 1 * C:2 * C])
    v = split_heads(qkv[:, 2 * C:3 * C])

    # Head-batched scores: contract full D without an explicit transpose of k.
    att = jnp.einsum("gtd,gsd->gts", q, k,
                     preferred_element_type=jnp.float32)        # (G, T, T)

    # Causal mask, built once from iota; finite fill avoids exp(-inf - -inf)
    # NaNs if rows are ever fully masked / padded.
    row = jax.lax.broadcasted_iota(jnp.int32, (T, T), 0)
    col = jax.lax.broadcasted_iota(jnp.int32, (T, T), 1)
    att = jnp.where((row >= col)[None, :, :], att, jnp.float32(-1e30))

    # Softmax with EUP reciprocal instead of a VPU divide.
    att = att - jnp.max(att, axis=-1, keepdims=True)
    p = jnp.exp(att)
    p = p * pl.reciprocal(jnp.sum(p, axis=-1, keepdims=True), approx=True)

    y = jnp.einsum("gts,gsd->gtd", p, v,
                   preferred_element_type=jnp.float32)          # (G, T, D)

    # Merge heads back to (R, C) and run the output projection as one matmul.
    y = y.reshape(n_head, R, D)
    y = pltpu.einshape("hrd->rhd", y)
    y = y.reshape(R, C)
    out = jnp.dot(y, w_proj_ref[...], preferred_element_type=jnp.float32)
    out = out + b_proj_ref[...]                          # (R, C) + (1, C)

    o_ref[...] = out.reshape(blk_b, T, C).astype(o_ref.dtype)


def _pick_block_b(B):
    # Fatten the per-step block to amortize pipeline overhead, but keep at
    # least 2 parallel grid steps whenever B >= 2 (two TensorCores on v7x).
    if B <= 1:
        return 1
    for cand in range(B // 2, 0, -1):
        if B % cand == 0:
            return cand
    return 1


def causal_self_attention(x, w_attn, b_attn, w_proj, b_proj, *, n_head,
                          block_b=None):
    """x: (B, T, C); w_attn: (C, 3C); b_attn: (1, 3C); w_proj: (C, C); b_proj: (1, C)."""
    B, T, C = x.shape
    assert C % n_head == 0
    if block_b is None:
        block_b = _pick_block_b(B)
    assert B % block_b == 0

    kernel = functools.partial(_attn_kernel, n_head=n_head)
    return pl.pallas_call(
        kernel,
        out_shape=jax.ShapeDtypeStruct((B, T, C), x.dtype),
        grid_spec=pltpu.PrefetchScalarGridSpec(
            num_scalar_prefetch=0,
            grid=(B // block_b,),
            in_specs=[
                pl.BlockSpec((block_b, T, C), lambda i: (i, 0, 0)),
                # Weights/biases: constant index_map -> fetched once, resident
                # across grid steps (single-buffer these for very large C).
                pl.BlockSpec((C, 3 * C), lambda i: (0, 0)),
                pl.BlockSpec((1, 3 * C), lambda i: (0, 0)),
                pl.BlockSpec((C, C), lambda i: (0, 0)),
                pl.BlockSpec((1, C), lambda i: (0, 0)),
            ],
            out_specs=pl.BlockSpec((block_b, T, C), lambda i: (i, 0, 0)),
        ),
        compiler_params=pltpu.CompilerParams(
            dimension_semantics=("parallel",)),
    )(x, w_attn, b_attn, w_proj, b_proj)


def _reference(x, w_attn, b_attn, w_proj, b_proj, n_head):
    """Pure-JAX reference mirroring the PyTorch forward (dropout=0)."""
    B, T, C = x.shape
    D = C // n_head
    qkv = x @ w_attn + b_attn[0]
    q, k, v = jnp.split(qkv, 3, axis=-1)
    q = q.reshape(B, T, n_head, D).transpose(0, 2, 1, 3)
    k = k.reshape(B, T, n_head, D).transpose(0, 2, 1, 3)
    v = v.reshape(B, T, n_head, D).transpose(0, 2, 1, 3)
    att = jnp.einsum("bhqd,bhkd->bhqk", q, k) / math.sqrt(D)
    mask = jnp.tril(jnp.ones((T, T), dtype=bool))
    att = jnp.where(mask, att, -jnp.inf)
    att = jax.nn.softmax(att, axis=-1)
    y = jnp.einsum("bhqk,bhkd->bhqd", att, v)
    y = y.transpose(0, 2, 1, 3).reshape(B, T, C)
    return y @ w_proj + b_proj[0]


if __name__ == "__main__":
    # Config: n_embd=32, n_head=4, block_size>=T, bias=True, dropout=0.0 (eval).
    B, T, C, n_head = 2, 8, 32, 4

    key = jax.random.PRNGKey(0)
    kx, k1, k2, k3, k4 = jax.random.split(key, 5)

    x = jax.random.normal(kx, (B, T, C), dtype=jnp.float32)

    # nn.Linear weights are (out_features, in_features); transpose for x @ W.
    w_attn_t = jax.random.normal(k1, (3 * C, C), dtype=jnp.float32) * 0.02
    b_attn = (jax.random.normal(k2, (3 * C,), dtype=jnp.float32) * 0.02).reshape(1, 3 * C)
    w_proj_t = jax.random.normal(k3, (C, C), dtype=jnp.float32) * 0.02
    b_proj = (jax.random.normal(k4, (C,), dtype=jnp.float32) * 0.02).reshape(1, C)

    w_attn = w_attn_t.T  # (C, 3C)
    w_proj = w_proj_t.T  # (C, C)

    y = causal_self_attention(x, w_attn, b_attn, w_proj, b_proj, n_head=n_head)
    y = jax.block_until_ready(y)

    y_ref = _reference(x, w_attn, b_attn, w_proj, b_proj, n_head)
    # Slightly loose tolerance: kernel softmax uses approx EUP reciprocal.
    assert jnp.allclose(y, y_ref, atol=2e-3, rtol=2e-3), "mismatch vs reference"

    # TODO(synk): attn/resid dropout is identity here (inference); training-time
    # dropout would use pltpu.prng_seed / pltpu.prng_random_bits.
    print("KERNEL_OK")
</pallas_src>

<mosaic_0001>
module attributes {stable_mosaic.version = 11 : i64} {
  func.func @_attn_kernel(%arg0: i32, %arg1: memref<1x8x32xf32, #tpu.memory_space<vmem>>, %arg2: memref<32x96xf32, #tpu.memory_space<vmem>>, %arg3: memref<1x96xf32, #tpu.memory_space<vmem>>, %arg4: memref<32x32xf32, #tpu.memory_space<vmem>>, %arg5: memref<1x32xf32, #tpu.memory_space<vmem>>, %arg6: memref<1x8x32xf32, #tpu.memory_space<vmem>>) attributes {dimension_semantics = [#tpu.dimension_semantics<parallel>], iteration_bounds = array<i64: 2>, scalar_prefetch = 0 : i64, scratch_operands = 0 : i64, tpu.core_type = #tpu.core_type<tc>, window_params = [{transform_indices = @transform_0, window_bounds = array<i64: 1, 8, 32>}, {pipeline_mode = #tpu.pipeline_mode<synchronous>, transform_indices = @transform_1, window_bounds = array<i64: 32, 96>}, {pipeline_mode = #tpu.pipeline_mode<synchronous>, transform_indices = @transform_2, window_bounds = array<i64: 1, 96>}, {pipeline_mode = #tpu.pipeline_mode<synchronous>, transform_indices = @transform_3, window_bounds = array<i64: 32, 32>}, {pipeline_mode = #tpu.pipeline_mode<synchronous>, transform_indices = @transform_4, window_bounds = array<i64: 1, 32>}, {transform_indices = @transform_5, window_bounds = array<i64: 1, 8, 32>}]} {
    %c0 = arith.constant 0 : index
    %c0_0 = arith.constant 0 : index
    %c0_1 = arith.constant 0 : index
    %0 = vector.load %arg1[%c0, %c0_0, %c0_1] : memref<1x8x32xf32, #tpu.memory_space<vmem>>, vector<1x8x32xf32>
    %1 = vector.shape_cast %0 : vector<1x8x32xf32> to vector<8x32xf32>
    %c0_2 = arith.constant 0 : index
    %c0_3 = arith.constant 0 : index
    %2 = vector.load %arg2[%c0_2, %c0_3] : memref<32x96xf32, #tpu.memory_space<vmem>>, vector<32x96xf32>
    %cst = arith.constant dense<0.000000e+00> : vector<8x96xf32>
    %3 = tpu.matmul %1, %2, %cst {dimension_numbers = #tpu.dot_dimension_numbers<[1], [0], [0], [1], [0, 0, 1, 1], [], []>} : vector<8x32xf32>, vector<32x96xf32>, vector<8x96xf32> -> vector<8x96xf32>
    %c0_4 = arith.constant 0 : index
    %c0_5 = arith.constant 0 : index
    %4 = vector.load %arg3[%c0_4, %c0_5] : memref<1x96xf32, #tpu.memory_space<vmem>>, vector<1x96xf32>
    %5 = vector.broadcast %4 : vector<1x96xf32> to vector<8x96xf32>
    %6 = arith.addf %3, %5 : vector<8x96xf32>
    %7 = vector.extract_strided_slice %6 {offsets = [0, 0], sizes = [8, 32], strides = [1, 1]} : vector<8x96xf32> to vector<8x32xf32>
    %8 = vector.shape_cast %7 : vector<8x32xf32> to vector<8x4x8xf32>
    %9 = tpu.transpose %8, [1, 0, 2] : vector<8x4x8xf32> -> vector<4x8x8xf32>
    %cst_6 = arith.constant 0.353553385 : f32
    %10 = vector.broadcast %cst_6 : f32 to vector<4x8x8xf32>
    %11 = arith.mulf %9, %10 : vector<4x8x8xf32>
    %12 = vector.extract_strided_slice %6 {offsets = [0, 32], sizes = [8, 32], strides = [1, 1]} : vector<8x96xf32> to vector<8x32xf32>
    %13 = vector.shape_cast %12 : vector<8x32xf32> to vector<8x4x8xf32>
    %14 = tpu.transpose %13, [1, 0, 2] : vector<8x4x8xf32> -> vector<4x8x8xf32>
    %15 = vector.extract_strided_slice %6 {offsets = [0, 64], sizes = [8, 32], strides = [1, 1]} : vector<8x96xf32> to vector<8x32xf32>
    %16 = vector.shape_cast %15 : vector<8x32xf32> to vector<8x4x8xf32>
    %17 = tpu.transpose %16, [1, 0, 2] : vector<8x4x8xf32> -> vector<4x8x8xf32>
    "tpu.trace_start"() <{level = 10 : i32, message = "gtd,gsd->gts"}> : () -> ()
    %cst_7 = arith.constant dense<0.000000e+00> : vector<4x8x8xf32>
    %18 = tpu.matmul %11, %14, %cst_7 {dimension_numbers = #tpu.dot_dimension_numbers<[2], [2], [1], [1], [0, 0, 0, 1, 1, 1], [0], [0]>} : vector<4x8x8xf32>, vector<4x8x8xf32>, vector<4x8x8xf32> -> vector<4x8x8xf32>
    "tpu.trace_stop"() : () -> ()
    %19 = tpu.iota {dimensions = array<i32: 0>} : vector<8x8xi32>
    %20 = tpu.iota {dimensions = array<i32: 1>} : vector<8x8xi32>
    %21 = arith.cmpi sge, %19, %20 : vector<8x8xi32>
    %22 = vector.shape_cast %21 : vector<8x8xi1> to vector<1x8x8xi1>
    %cst_8 = arith.constant -1.000000e+30 : f32
    %23 = vector.shape_cast %22 : vector<1x8x8xi1> to vector<1x8x8xi1>
    %24 = vector.broadcast %23 : vector<1x8x8xi1> to vector<4x8x8xi1>
    %25 = vector.broadcast %cst_8 : f32 to vector<4x8x8xf32>
    %26 = arith.select %24, %18, %25 : vector<4x8x8xi1>, vector<4x8x8xf32>
    %cst_9 = arith.constant dense<0xFF800000> : vector<4x8xf32>
    %27 = vector.multi_reduction <maximumf>, %26, %cst_9 [2] : vector<4x8x8xf32> to vector<4x8xf32>
    %28 = vector.shape_cast %27 : vector<4x8xf32> to vector<4x8x1xf32>
    %29 = vector.broadcast %28 : vector<4x8x1xf32> to vector<4x8x8xf32>
    %30 = arith.subf %26, %29 : vector<4x8x8xf32>
    %31 = math.exp %30 : vector<4x8x8xf32>
    %cst_10 = arith.constant dense<0.000000e+00> : vector<4x8xf32>
    %32 = vector.multi_reduction <add>, %31, %cst_10 [2] : vector<4x8x8xf32> to vector<4x8xf32>
    %33 = vector.shape_cast %32 : vector<4x8xf32> to vector<4x8x1xf32>
    %34 = tpu.reciprocal %33 {approx = true} : vector<4x8x1xf32> -> vector<4x8x1xf32>
    %35 = vector.broadcast %34 : vector<4x8x1xf32> to vector<4x8x8xf32>
    %36 = arith.mulf %31, %35 : vector<4x8x8xf32>
    "tpu.trace_start"() <{level = 10 : i32, message = "gts,gsd->gtd"}> : () -> ()
    %cst_11 = arith.constant dense<0.000000e+00> : vector<4x8x8xf32>
    %37 = tpu.matmul %36, %17, %cst_11 {dimension_numbers = #tpu.dot_dimension_numbers<[2], [1], [1], [2], [0, 0, 0, 1, 1, 2], [0], [0]>} : vector<4x8x8xf32>, vector<4x8x8xf32>, vector<4x8x8xf32> -> vector<4x8x8xf32>
    "tpu.trace_stop"() : () -> ()
    %38 = tpu.transpose %37, [1, 0, 2] : vector<4x8x8xf32> -> vector<8x4x8xf32>
    %39 = vector.shape_cast %38 : vector<8x4x8xf32> to vector<8x32xf32>
    %c0_12 = arith.constant 0 : index
    %c0_13 = arith.constant 0 : index
    %40 = vector.load %arg4[%c0_12, %c0_13] : memref<32x32xf32, #tpu.memory_space<vmem>>, vector<32x32xf32>
    %cst_14 = arith.constant dense<0.000000e+00> : vector<8x32xf32>
    %41 = tpu.matmul %39, %40, %cst_14 {dimension_numbers = #tpu.dot_dimension_numbers<[1], [0], [0], [1], [0, 0, 1, 1], [], []>} : vector<8x32xf32>, vector<32x32xf32>, vector<8x32xf32> -> vector<8x32xf32>
    %c0_15 = arith.constant 0 : index
    %c0_16 = arith.constant 0 : index
    %42 = vector.load %arg5[%c0_15, %c0_16] : memref<1x32xf32, #tpu.memory_space<vmem>>, vector<1x32xf32>
    %43 = vector.broadcast %42 : vector<1x32xf32> to vector<8x32xf32>
    %44 = arith.addf %41, %43 : vector<8x32xf32>
    %45 = vector.shape_cast %44 : vector<8x32xf32> to vector<1x8x32xf32>
    %c0_17 = arith.constant 0 : index
    %c0_18 = arith.constant 0 : index
    %c0_19 = arith.constant 0 : index
    %46 = vector.load %arg6[%c0_17, %c0_18, %c0_19] : memref<1x8x32xf32, #tpu.memory_space<vmem>>, vector<1x8x32xf32>
    tpu.vector_store %arg6[%c0_17, %c0_18, %c0_19], %45 {strides = array<i32>} : memref<1x8x32xf32, #tpu.memory_space<vmem>>, vector<1x8x32xf32>,
    return
  }
  func.func @transform_0(%arg0: i32) -> (i32, i32, i32) {
    %c0_i32 = arith.constant 0 : i32
    %c0_i32_0 = arith.constant 0 : i32
    %c0_i32_1 = arith.constant 0 : i32
    return %arg0, %c0_i32, %c0_i32_0 : i32, i32, i32
  }
  func.func @transform_1(%arg0: i32) -> (i32, i32) {
    %c0_i32 = arith.constant 0 : i32
    %c0_i32_0 = arith.constant 0 : i32
    %c0_i32_1 = arith.constant 0 : i32
    return %c0_i32, %c0_i32_0 : i32, i32
  }
  func.func @transform_2(%arg0: i32) -> (i32, i32) {
    %c0_i32 = arith.constant 0 : i32
    %c0_i32_0 = arith.constant 0 : i32
    %c0_i32_1 = arith.constant 0 : i32
    return %c0_i32, %c0_i32_0 : i32, i32
  }
  func.func @transform_3(%arg0: i32) -> (i32, i32) {
    %c0_i32 = arith.constant 0 : i32
    %c0_i32_0 = arith.constant 0 : i32
    %c0_i32_1 = arith.constant 0 : i32
    return %c0_i32, %c0_i32_0 : i32, i32
  }
  func.func @transform_4(%arg0: i32) -> (i32, i32) {
    %c0_i32 = arith.constant 0 : i32
    %c0_i32_0 = arith.constant 0 : i32
    %c0_i32_1 = arith.constant 0 : i32
    return %c0_i32, %c0_i32_0 : i32, i32
  }
  func.func @transform_5(%arg0: i32) -> (i32, i32, i32) {
    %c0_i32 = arith.constant 0 : i32
    %c0_i32_0 = arith.constant 0 : i32
    %c0_i32_1 = arith.constant 0 : i32
    return %arg0, %c0_i32, %c0_i32_0 : i32, i32, i32
  }
}

</mosaic_0001>

<bundles_post_ra>
// kernel: tpu_custom_call.1
= control target key start
LH: loop header
LB: loop body
LE: loop exit
PB: predicated region body
PF: predicated region fallthrough
CT: control target
= control target key end

     0   :  { %10 = vsyncpa [#allocation3], 0  ;;  %s2660_s0 = inlined_call_operand.hbm [shape: f32[2,8,32], index: 0, kind: input, shape index: {}]   ;;  %s2661_s1 = inlined_call_operand.hbm [shape: f32[32,96], index: 1, kind: input, shape index: {}]   ;;  %s2662_s2 = inlined_call_operand.vmem [shape: f32[1,96], index: 2, kind: input, shape index: {}]   ;;  %s2663_s3 = inlined_call_operand.hbm [shape: f32[32,32], index: 3, kind: input, shape index: {}]   ;;  %s2664_s4 = inlined_call_operand.vmem [shape: f32[1,32], index: 4, kind: input, shape index: {}]   ;;  %s2665_s5 = inlined_call_operand.hbm [shape: f32[2,8,32], index: 5, kind: output, shape index: {}]  }
   0x1   :  { %12 = vsyncpa [#allocation3 + $0x1], 0 }
   0x2   :  { %13 = vsyncpa [#allocation6], 0 }
   0x3   :  { %14 = vsyncpa [#allocation4], 0 }
   0x4   :  { %16 = vsyncpa [#allocation4 + $0x1], 0  ;;  %s2239_s18 = smov 0   ;;  %s2241_s19 = smov 0  }
   0x5   :  { %s2243_s20 = smov 0   ;;  %s2245_s21 = smov 0  }
   0x6 LB: > { %s2260_s22 = sadd.s32 4294967295, %s2188_s21   ;;  %s1794_s23 = sadd.s32 4294967294, %s2188_s21   ;;  %s2188_s21 = sphi %s2245_s21, %s2685_s21   ;;  %s2184_s20 = sphi %s2243_s20, %s2684_s20   ;;  %s2180_s19 = sphi %s2241_s19, %s2683_s19   ;;  %s2176_s18 = sphi %s2239_s18, %s2682_s18  }
   0x7   : > { %p42_p0 = scmp.ne.s32.totalorder %s2180_s19, %s2176_s18  ;;  %p2666_p1 = scmp.eq.s32.totalorder %s2260_s22, 0 }
   0x8   : > { %p156_p3 = scmp.eq.s32.totalorder %s1794_s23, 1  ;;  %p1795_p5 = scmp.ge.s32.totalorder %s2188_s21, 1 }
   0x9   : > { %p2269_p4 = por %p2666_p1, %p42_p0  ;;  %p163_p7 = scmp.lt.s32.totalorder %s2188_s21, 3 }
   0xa   : > { %p2274_p6 = por %p156_p3, %p42_p0  ;;  %s2190_s27 = smov [#allocation5]  }
   0xb   : > { %s2669_s24 = scalar_select %p2269_p4, 1, 0 }
   0xc   : > { %s2670_s25 = scalar_select %p2274_p6, 1, 0 }
   0xd   : > { %p2279_p8 = pnand %p1795_p5, %p163_p7  ;;  %s175_s28 = sshll.u32 %s2190_s27, 4  ;;  %s2283_s28 = int_to_ptr.vmem [resolvable:$true] %s175_s28 }
   0xe   : > { %s2191_s30 = smov [#allocation7]   ;;  %s2032_s9 = scalar_lea.hbm %s2661_s1, 512 }
   0xf   : > { %p1946_p9 = pneg %p2279_p8  ;;  %s191_s6 = sshll.u32 %s2191_s30, 4  ;;  %s2294_s6 = int_to_ptr.vmem [resolvable:$true] %s191_s6 }
  0x10   : > { %p2033_p12 = scmp.ne.s32.totalorder %s2661_s1, %s2032_s9  ;;  %p2039_p5 = scmp.lt.u32.totalorder %s2032_s9, %s2661_s1 }
  0x11   : > { %p2290_p11 = pnand %p1946_p9, %p2666_p1 }
  0x13   : > { %p2034_p13 = pneg %p2290_p11 }
  0x15   : > { %p2035_p0 = pnand %p2034_p13, %p2033_p12 }
  0x17   : > { %p2036_p3 = pneg %p2035_p0 }
  0x19   : > { %p2041_p7 = pnand %p2039_p5, %p2036_p3 }
  0x1b   : > { %2044 = shalt.err (!%p2041_p7)
}
  0x1c   : > { %s2045_s14 = scalar_lea.vmem %s2283_s28, 512  ;;  %p2053_p2 = scmp.lt.s32.totalorder %s2283_s28, %s2283_s28 }
  0x1d   : > { %p2046_p9 = scmp.ne.s32.totalorder %s2283_s28, %s2045_s14  ;;  %p2054_p12 = scmp.lt.s32.totalorder %s2045_s14, %s2045_s14 }
  0x1f   : > { %p2048_p10 = pnand %p2046_p9, %p2034_p13  ;;  %p2055_p0 = por %p2054_p12, %p2053_p2 }
  0x21   : > { %p2049_p1 = pneg %p2048_p10 }
  0x23   : > { %p2056_p6 = pnand %p2055_p0, %p2049_p1 }
  0x25   : > { %2059 = shalt.err (!%p2056_p6)
}
  0x26   : > { %s2192_s15 = smov 128   ;;  %s2193_s16 = smov 8  }
  0x27   : > { %1949 = dma.hbm_to_vmem [thread:$0]  (!%p2290_p11), %s2661_s1, 512, %s2283_s28, [#allocation6], %s2192_s15, %s2192_s15, %s2193_s16  }
  0x28   : > { %s2060_s7 = scalar_lea.hbm %s2663_s3, 512 }
  0x29   : > { %p2061_p2 = scmp.ne.s32.totalorder %s2663_s3, %s2060_s7  ;;  %p2067_p10 = scmp.lt.u32.totalorder %s2060_s7, %s2663_s3 }
  0x2b   : > { %p2063_p1 = pnand %p2061_p2, %p2034_p13 }
  0x2d   : > { %p2064_p6 = pneg %p2063_p1 }
  0x2f   : > { %p2069_p3 = pnand %p2067_p10, %p2064_p6 }
  0x31   : > { %2072 = shalt.err (!%p2069_p3)
}
  0x32   : > { %s2073_s28 = scalar_lea.vmem %s2294_s6, 512  ;;  %p2081_p12 = scmp.lt.s32.totalorder %s2294_s6, %s2294_s6 }
  0x33   : > { %p2074_p5 = scmp.ne.s32.totalorder %s2294_s6, %s2073_s28  ;;  %p2082_p0 = scmp.lt.s32.totalorder %s2073_s28, %s2073_s28 }
  0x35   : > { %p2076_p7 = pnand %p2074_p5, %p2034_p13  ;;  %p2083_p2 = por %p2082_p0, %p2081_p12 }
  0x37   : > { %p2077_p9 = pneg %p2076_p7 }
  0x39   : > { %p2084_p1 = pnand %p2083_p2, %p2077_p9 }
  0x3b   : > { %2087 = shalt.err (!%p2084_p1)
}
  0x3c   : > { %1952 = dma.hbm_to_vmem [thread:$0]  (!%p2290_p11), %s2663_s3, 512, %s2294_s6, [#allocation6], %s2192_s15, %s2192_s15, %s2193_s16  }
  0x3d   : > { %s2349_s14 = sadd.s32 1, %s2188_s21   ;;  %s29_s29 = sadd.s32 1, %s2184_s20 }
  0x3e   : > { %s26_s17 = ssub.s32 %s2188_s21, %s2349_s14  ;;  %p36_p13 = scmp.ne.s32.totalorder %s2184_s20, %s2180_s19 }
  0x3f   : > { %p27_p6 = scmp.eq.s32.totalorder %s26_s17, 0  ;;  %p37_p10 = scmp.eq.s32.totalorder %s2188_s21, 0 }
  0x40   : > { %p2673_p3 = scmp.eq.s32.totalorder %s2260_s22, 1  ;;  %p1963_p7 = scmp.lt.s32.totalorder %s2188_s21, 2 }
  0x41   : > { %s2365_s27 = scalar_select %p27_p6, %s2184_s20, %s29_s29  }
  0x42   : > { %p2359_p5 = por %p2673_p3, %p36_p13  ;;  %p38_p9 = por %p37_p10, %p36_p13 }
  0x43   : > { %s208_s30 = sand.u32 1, %s2184_s20   ;;  %s1800_s6 = sshll.u32 %s2188_s21, 7 }
  0x44   : > { %s2674_s23 = scalar_select %p2359_p5, 1, 0 }
  0x45   : > { %s1799_s7 = sshll.u32 %s208_s30, 3  ;;  %s2372_s8 = scalar_lea.hbm %s2660_s0, %s1800_s6 }
  0x46   : > { %s212_s9 = scalar_lea.vmem [#allocation2], %s1799_s7  ;;  %p2376_p11 = pnand %p1963_p7, %p38_p9 }
  0x47   : > { %s219_s10 = sshll.u32 %s212_s9, 4  ;;  %s209_s28 = scalar_lea.sflag [#allocation3], %s208_s30  ;;  %s2374_s10 = int_to_ptr.vmem [resolvable:$true] %s219_s10 }
  0x48   : > { %s2088_s12 = scalar_lea.hbm %s2372_s8, 128  ;;  %p2090_p0 = pneg %p2376_p11 }
  0x49   : > { %p2089_p12 = scmp.ne.s32.totalorder %s2372_s8, %s2088_s12  ;;  %s2093_s17 = scalar_lea.hbm %s2660_s0, 256 }
  0x4a   : > { %p2094_p13 = scmp.lt.u32.totalorder %s2372_s8, %s2660_s0  ;;  %p2095_p6 = scmp.lt.u32.totalorder %s2093_s17, %s2088_s12 }
  0x4b   : > { %p2091_p2 = pnand %p2090_p0, %p2089_p12  ;;  %p2097_p3 = scmp.lt.u32.totalorder %s2088_s12, %s2372_s8 }
  0x4c   : > { %p2096_p10 = por %p2095_p6, %p2094_p13 }
  0x4d   : > { %p2092_p1 = pneg %p2091_p2 }
  0x4e   : > { %p2098_p7 = por %p2097_p3, %p2096_p10 }
  0x50   : > { %p2099_p9 = pnand %p2098_p7, %p2092_p1 }
  0x52   : > { %2102 = shalt.err (!%p2099_p9)
}
  0x53   : > { %s2103_s30 = scalar_lea.vmem %s2374_s10, 128  ;;  %s2194_s15 = smov [#allocation2]  }
  0x54   : > { %p2104_p12 = scmp.ne.s32.totalorder %s2374_s10, %s2103_s30  ;;  %s2108_s16 = sshll.u32 %s2194_s15, 4  ;;  %s2109_s16 = int_to_ptr.vmem [resolvable:$false] %s2108_s16 }
  0x55   : > { %s2110_s9 = scalar_lea.vmem %s2109_s16, 256  ;;  %p2111_p4 = scmp.lt.s32.totalorder %s2374_s10, %s2109_s16 }
  0x56   : > { %p2106_p2 = pnand %p2104_p12, %p2090_p0  ;;  %p2112_p13 = scmp.lt.s32.totalorder %s2110_s9, %s2103_s30 }
  0x58   : > { %p2107_p5 = pneg %p2106_p2  ;;  %p2113_p6 = por %p2112_p13, %p2111_p4 }
  0x5a   : > { %p2114_p10 = pnand %p2113_p6, %p2107_p5 }
  0x5c   : > { %2117 = shalt.err (!%p2114_p10)
}
  0x5d   : > { %1956 = dma.hbm_to_vmem [thread:$0]  (!%p2376_p11), %s2372_s8, 128, %s2374_s10, %s209_s28  }
  0x5e   : > { %228 = sbr.rel (%p2279_p8) target bundleno = 1715 (0x6b3), region = 40  ;;  %s2408_s12 = sand.u32 (!%p2279_p8), 1, %s2180_s19  }
  0x5f   : > { %s1802_s13 = sshll.u32 (!%p2279_p8), %s2408_s12, 3  ;;  %s231_s29 = scalar_lea.sflag (!%p2279_p8), [#allocation3], %s2408_s12 }
  0x60   : > { %s234_s17 = scalar_lea.vmem (!%p2279_p8), [#allocation2], %s1802_s13  ;;  %p2676_p4 = scmp.ne.s32.totalorder (!%p2279_p8), %s2669_s24, 0 }
  0x65   : > { %2163 = dma.done.wait (%p2676_p4), %s231_s29, 128  }
  0x66   : > { %2165 = vsyncadd (%p2676_p4), %s231_s29, 4294967168  ;;  %p2677_p5 = scmp.eq.s32.totalorder %s2260_s22, 0 }
  0x68   : > { %2167 = dma.done.wait (%p2677_p5), [#allocation6], 1024   ;;  %p2678_p8 = pmov %p2677_p5 }
  0x69   : > { %v2195_v0 = vmov 0.0|0.0   ;;  %vm2196_vm0 = vmmov 0   ;;  %v2197_v1 = vmov 0.0   ;;  %v270_v2 = vld [vmem:[#allocation5] sm:$0xff]  ;;  %v271_v3 = vld [vmem:[#allocation5 + $0x8] sm:$0xff]  ;;  %v272_v4 = vld [vmem:[#allocation5 + $0x10] sm:$0xff]  ;;  %v370_v18 = vlaneseq }
  0x6a   : > { %2169 = vsyncadd (%p2678_p8), [#allocation6], 4294966272  ;;  %1922 = vmatprep.subr.bf16.mxu0 %v2195_v0  ;;  %1868 = vmatprep.mubr.msk.f32.mxu0 %vm2196_vm0, %v2197_v1  ;;  %v1923_v5 = vpack.c.bf16 %v271_v3, %v270_v2  ;;  %v273_v6 = vld [vmem:[#allocation5 + $0x18] sm:$0xff]  ;;  %vm281_vm1 = vcmask 261120   ;;  %v1806_v9 = vld [vmem:[%s2662_s2] ss:$0 sm:$0xff] }
  0x6b   : > { %1871 = vmatprep.subr.mxu1 %v2197_v1  ;;  %1873 = vmatprep.mubr.msk.f32.mxu1 %vm2196_vm0, %v2197_v1  ;;  %v1926_v7 = vpack.c.bf16 %v273_v6, %v272_v4  ;;  %v269_v8 = vld [vmem:[%s234_s17] sm:$0xff]  ;;  %s2198_s8 = smov 104   ;;  %s2199_s10 = smov 120   ;;  %v2202_v16 = vmov 1983009808   ;;  %v2452_v20 = vshrl.u32 %v370_v18, 7 }
  0x6c   : > { %1924 = vmatpush3.bf16.msra.mxu0 %v1923_v5  ;;  %s2200_s11 = smov 96   ;;  %s2201_s28 = smov 112   ;;  %v368_v17 = vunpack.c.l.s4 %v2202_v16  ;;  %v2203_v21 = vmov 1934713408   ;;  %vm801_vm2 = vcmask 64512   ;;  %vm1602_vm4 = vcmask 130048  }
  0x6d   : > { %1925 = vmatprep.subr.bf16.mxu0 %v2195_v0  ;;  %v400_v22 = vunpack.c.l.s4 %v2203_v21  ;;  %s2204_s7 = smov 64   ;;  %s2205_s6 = smov 16   ;;  %vm1604_vm5 = vcmask 195584  }
  0x6e   : > { %v369_v19 = vunpack.c.0.s8 %v368_v17  ;;  %s2206_s30 = smov 8   ;;  %s2207_s15 = smov 24  }
  0x6f   : > { %v401_v28 = vunpack.c.0.s8 %v400_v22  ;;  %s1831_s29 = sshll.u32 %s2260_s22, 7  ;;  %s268_s17 = scalar_lea.vmem [#allocation8], %s1802_s13 }
  0x70   : > { %1927 = vmatpush3.bf16.msra.mxu0 %v1926_v7  ;;  %v2459_v25 = vsub.s32 %v369_v19, %v2452_v20  ;;  %s1705_s24 = sshll.u32 %s268_s17, 4  ;;  %p2679_p0 = scmp.ne.s32.totalorder %s2674_s23, 0  ;;  %s2617_s24 = int_to_ptr.vmem [resolvable:$true] %s1705_s24 }
  0x71   : > { %1891 = vmatprep.subr.mxu0 %v2197_v1  ;;  %v2470_v33 = vsub.s32 %v401_v28, %v2452_v20  ;;  %s2118_s22 = scalar_lea.vmem %s2617_s24, 128  ;;  %s2208_s13 = smov [#allocation8]  }
  0x72   : > { %p2119_p11 = scmp.ne.s32.totalorder %s2617_s24, %s2118_s22 }
  0x73   : > { %1869 = vmatmul.mubr.msk.f32.vlgmr.msra.gmra.mrb[0].mxu0 %vm281_vm1, %v269_v8 }
  0x74   : > { %1893 = vmatprep.mubr.msk.f32.mxu0 %vm2196_vm0, %v2197_v1  ;;  %p2120_p1 = pnand %p2119_p11, %p2679_p0 }
  0x76   : > { %p2121_p3 = pneg %p2120_p1 }
 0x146   : > { %v351_v10 = vpop.f32.mrb[0].mxu0 }
 0x147   : > { %v2436_v11 = vadd.f32 %v1806_v9, %v351_v10  ;;  %v1870_v12 = vpop.f32.mrb[1].mxu0 }
 0x149   : > { %362 = vrot.lane.b32.xlu1 %v2436_v11, %s2198_s8  ;;  %356 = vrot.lane.b32.xlu0 %v2436_v11, %s2199_s10  ;;  %s2615_s10 = scalar_lea.hbm %s2665_s5, %s1831_s29 }
 0x14d   : > { %505 = vrot.lane.b32.xlu1 %v2436_v11, %s2200_s11  ;;  %359 = vrot.lane.b32.xlu0 %v2436_v11, %s2201_s28  ;;  %s2122_s28 = sshll.u32 %s2208_s13, 4  ;;  %s2123_s28 = int_to_ptr.vmem [resolvable:$false] %s2122_s28 }
 0x14e   : > { %p2125_p7 = scmp.lt.s32.totalorder %s2617_s24, %s2123_s28 }
 0x1bb   : > { %v2442_v13 = vpop.permute.xlu0 %356  ;;  %v2445_v14 = vpop.permute.xlu1 %362 }
 0x1bc   : > { %507 = vrot.lane.b32.xlu0 %v2442_v13, %s2200_s11  ;;  %v381_v26 = vcombine.low %v2442_v13, %v2445_v14  ;;  %v382_v27 = vcombine.high %v2442_v13, %v2445_v14 }
 0x1be   : > { %v389_v31 = vrot.slane %v381_v26, %v2459_v25  ;;  %v396_v32 = vrot.slane %v382_v27, %v2459_v25 }
 0x1bf   : > { %v2447_v15 = vpop.permute.xlu0 %359  ;;  %v506_v38 = vpop.permute.xlu1 %505 }
 0x1c0   : > { %511 = vrot.lane.b32.xlu0 %v2445_v14, %s2200_s11  ;;  %509 = vrot.lane.b32.xlu1 %v2447_v15, %s2200_s11  ;;  %v365_v23 = vcombine.low %v2436_v11, %v2447_v15  ;;  %v366_v24 = vcombine.high %v2436_v11, %v2447_v15  ;;  %s1692_s11 = scalar_lea.sflag [#allocation4], %s2408_s12 }
 0x1c2   : > { %v373_v29 = vrot.slane %v365_v23, %v2459_v25  ;;  %v380_v30 = vrot.slane %v366_v24, %v2459_v25 }
 0x1c4   : > { %v397_v34 = vcombine.low %v373_v29, %v389_v31  ;;  %v398_v35 = vcombine.high %v373_v29, %v389_v31  ;;  %v413_v36 = vcombine.low %v380_v30, %v396_v32  ;;  %v414_v37 = vcombine.high %v380_v30, %v396_v32 }
 0x1c6   : > { %v405_v39 = vrot.slane %v397_v34, %v2470_v33  ;;  %v412_v40 = vrot.slane %v398_v35, %v2470_v33  ;;  %v421_v41 = vrot.slane %v413_v36, %v2470_v33  ;;  %v428_v42 = vrot.slane %v414_v37, %v2470_v33 }
 0x1c8   : > { %v433_v44 = vcombine.low %v405_v39, %v412_v40  ;;  %v1808_v45 = vcombine.high %v405_v39, %v412_v40  ;;  %v449_v46 = vcombine.low %v421_v41, %v428_v42  ;;  %v1809_v47 = vcombine.high %v421_v41, %v428_v42 }
 0x1ca   : > { %v440_v58 = vrot.slane %v433_v44, %v2459_v25  ;;  %v448_v59 = vrot.slane %v1808_v45, %v2459_v25  ;;  %v456_v60 = vrot.slane %v449_v46, %v2459_v25  ;;  %v464_v61 = vrot.slane %v1809_v47, %v2459_v25 }
 0x1cc   : > { %v465_v8 = vcombine.low %v440_v58, %v448_v59  ;;  %v481_v9 = vcombine.low %v456_v60, %v464_v61  ;;  %v466_v31 = vcombine.high %v440_v58, %v448_v59  ;;  %v482_v32 = vcombine.high %v456_v60, %v464_v61 }
 0x1ce   : > { %v473_v24 = vrot.slane %v465_v8, %v2470_v33  ;;  %v489_v26 = vrot.slane %v481_v9, %v2470_v33  ;;  %v480_v40 = vrot.slane %v466_v31, %v2470_v33  ;;  %v496_v41 = vrot.slane %v482_v32, %v2470_v33 }
 0x1d0   : > { %v497_v34 = vcombine.low %v473_v24, %v489_v26  ;;  %v499_v46 = vcombine.low %v480_v40, %v496_v41 }
 0x1d2   : > { %v501_v39 = vmul.f32 0.35355338, %v497_v34 }
 0x22e   : > { %v508_v43 = vpop.permute.xlu0 %507 }
 0x232   : > { %v510_v48 = vpop.permute.xlu1 %509  ;;  %v512_v49 = vpop.permute.xlu0 %511 }
 0x233   : > { %v517_v50 = vcombine.low %v506_v38, %v510_v48  ;;  %v518_v51 = vcombine.high %v506_v38, %v510_v48  ;;  %v533_v52 = vcombine.low %v508_v43, %v512_v49  ;;  %v534_v53 = vcombine.high %v508_v43, %v512_v49 }
 0x234   : > { %v498_v38 = vcombine.high %v473_v24, %v489_v26  ;;  %v503_v48 = vmul.f32 0.35355338, %v499_v46  ;;  %v500_v49 = vcombine.high %v480_v40, %v496_v41 }
 0x235   : > { %v525_v54 = vrot.slane %v517_v50, %v2459_v25  ;;  %v532_v55 = vrot.slane %v518_v51, %v2459_v25  ;;  %v541_v56 = vrot.slane %v533_v52, %v2459_v25  ;;  %v548_v57 = vrot.slane %v534_v53, %v2459_v25 }
 0x236   : > { %v502_v45 = vmul.f32 0.35355338, %v498_v38  ;;  %v504_v51 = vmul.f32 0.35355338, %v500_v49  ;;  %v1109_v52 = vand.u32 127, %v370_v18 }
 0x237   : > { %v549_v62 = vcombine.low %v525_v54, %v541_v56  ;;  %v550_v63 = vcombine.high %v525_v54, %v541_v56  ;;  %v565_v2 = vcombine.low %v532_v55, %v548_v57  ;;  %v566_v3 = vcombine.high %v532_v55, %v548_v57 }
 0x238   : > { %vm1110_vm3 = vcmp.ge.s32.totalorder %v2452_v20, %v1109_v52 }
 0x239   : > { %v557_v4 = vrot.slane %v549_v62, %v2470_v33  ;;  %v564_v5 = vrot.slane %v550_v63, %v2470_v33  ;;  %v573_v6 = vrot.slane %v565_v2, %v2470_v33  ;;  %v580_v7 = vrot.slane %v566_v3, %v2470_v33 }
 0x23b   : > { %v585_v10 = vcombine.low %v557_v4, %v564_v5  ;;  %v1810_v12 = vcombine.high %v557_v4, %v564_v5  ;;  %v601_v16 = vcombine.low %v573_v6, %v580_v7  ;;  %v1811_v17 = vcombine.high %v573_v6, %v580_v7 }
 0x23d   : > { %v592_v19 = vrot.slane %v585_v10, %v2459_v25  ;;  %v600_v21 = vrot.slane %v1810_v12, %v2459_v25  ;;  %v608_v22 = vrot.slane %v601_v16, %v2459_v25  ;;  %v616_v23 = vrot.slane %v1811_v17, %v2459_v25 }
 0x23f   : > { %v617_v27 = vcombine.low %v592_v19, %v600_v21  ;;  %v633_v28 = vcombine.low %v608_v22, %v616_v23  ;;  %v618_v35 = vcombine.high %v592_v19, %v600_v21  ;;  %v634_v36 = vcombine.high %v608_v22, %v616_v23 }
 0x241   : > { %v625_v29 = vrot.slane %v617_v27, %v2470_v33  ;;  %v641_v30 = vrot.slane %v633_v28, %v2470_v33  ;;  %v632_v43 = vrot.slane %v618_v35, %v2470_v33  ;;  %v648_v44 = vrot.slane %v634_v36, %v2470_v33 }
 0x243   : > { %v649_v37 = vcombine.low %v625_v29, %v641_v30  ;;  %v650_v42 = vcombine.high %v625_v29, %v641_v30  ;;  %v651_v47 = vcombine.low %v632_v43, %v648_v44  ;;  %v652_v50 = vcombine.high %v632_v43, %v648_v44 }
 0x245   : > { %1872 = vmatpush3.xpose.msk.msra.mxu1 %vm801_vm2, %v649_v37 }
 0x246   : > { %1876 = vmatprep.subr.mxu1 %v2197_v1 }
 0x248   : > { %1874 = vmatmul.mubr.msk.f32.vlgmr.msra.gmra.mrb[0].mxu1 %vm801_vm2, %v501_v39 }
 0x249   : > { %1877 = vmatpush3.xpose.msk.msra.mxu1 %vm801_vm2, %v650_v42  ;;  %1878 = vmatprep.mubr.msk.f32.mxu1 %vm2196_vm0, %v2197_v1 }
 0x24a   : > { %1881 = vmatprep.subr.mxu1 %v2197_v1 }
 0x24c   : > { %1879 = vmatmul.mubr.msk.f32.vlgmr.msra.gmra.mrb[2].mxu1 %vm801_vm2, %v502_v45 }
 0x24d   : > { %1882 = vmatpush3.xpose.msk.msra.mxu1 %vm801_vm2, %v651_v47  ;;  %1883 = vmatprep.mubr.msk.f32.mxu1 %vm2196_vm0, %v2197_v1 }
 0x24e   : > { %1886 = vmatprep.subr.mxu1 %v2197_v1 }
 0x250   : > { %1884 = vmatmul.mubr.msk.f32.vlgmr.msra.gmra.mrb[4].mxu1 %vm801_vm2, %v503_v48 }
 0x251   : > { %1887 = vmatpush3.xpose.msk.msra.mxu1 %vm801_vm2, %v652_v50  ;;  %1888 = vmatprep.mubr.msk.f32.mxu1 %vm2196_vm0, %v2197_v1 }
 0x252   : > { %1896 = vmatprep.subr.mxu1 %v2197_v1 }
 0x254   : > { %1889 = vmatmul.mubr.msk.f32.vlgmr.msra.gmra.mrb[6].mxu1 %vm801_vm2, %v504_v51 }
 0x255   : > { %1898 = vmatprep.mubr.msk.f32.mxu1 %vm2196_vm0, %v2197_v1 }
 0x31b   : > { %v874_v53 = vpop.f32.mrb[0].mxu1 }
 0x31c   : > { %v1113_v54 = vsel %vm1110_vm3, %v874_v53, -1e+30  ;;  %v1875_v55 = vpop.f32.mrb[1].mxu1 }
 0x31d   : > { %v1117_v56 = vsel %vm801_vm2, %v1113_v54, -inf }
 0x31e   : > { %1118 = vmax.xlane.f32.xlu1 %v1117_v56 }
 0x31f   : > { %v950_v57 = vpop.f32.mrb[2].mxu1 }
 0x320   : > { %v1114_v58 = vsel %vm1110_vm3, %v950_v57, -1e+30  ;;  %v1880_v59 = vpop.f32.mrb[3].mxu1 }
 0x321   : > { %v1120_v60 = vsel %vm801_vm2, %v1114_v58, -inf }
 0x322   : > { %1121 = vmax.xlane.f32.xlu0 %v1120_v60 }
 0x323   : > { %v1026_v61 = vpop.f32.mrb[4].mxu1 }
 0x324   : > { %v1115_v18 = vsel %vm1110_vm3, %v1026_v61, -1e+30  ;;  %v1885_v62 = vpop.f32.mrb[5].mxu1 }
 0x325   : > { %v1123_v63 = vsel %vm801_vm2, %v1115_v18, -inf }
 0x326   : > { %1124 = vmax.xlane.f32.xlu0 %v1123_v63 }
 0x327   : > { %v1102_v2 = vpop.f32.mrb[6].mxu1 }
 0x328   : > { %v1116_v3 = vsel %vm1110_vm3, %v1102_v2, -1e+30  ;;  %v1890_v4 = vpop.f32.mrb[7].mxu1 }
 0x329   : > { %v1126_v5 = vsel %vm801_vm2, %v1116_v3, -inf }
 0x32a   : > { %1127 = vmax.xlane.f32.xlu1 %v1126_v5 }
 0x33b   : > { %655 = vrot.lane.b32.xlu1 %v2442_v13, %s2204_s7 }
 0x33c   : > { %653 = vrot.lane.b32.xlu0 %v2436_v11, %s2204_s7 }
 0x3ab   : > { %v1119_v6 = vpop.xlane.xlu1 %1118 }
 0x3ac   : > { %v1129_v7 = vsub.f32 %v1113_v54, %v1119_v6 }
 0x3ae   : > { %v1133_v8 = vmul.f32 1.442695, %v1129_v7 }
 0x3af   : > { %v1122_v9 = vpop.xlane.xlu0 %1121 }
 0x3b0   : > { %2016 = vpow2.f32 %v1133_v8  ;;  %v1130_v10 = vsub.f32 %v1114_v58, %v1122_v9 }
 0x3b2   : > { %v1135_v12 = vmul.f32 1.442695, %v1130_v10 }
 0x3b3   : > { %v1125_v20 = vpop.xlane.xlu0 %1124 }
 0x3b4   : > { %2018 = vpow2.f32 %v1135_v12  ;;  %v1131_v16 = vsub.f32 %v1115_v18, %v1125_v20 }
 0x3b6   : > { %v1137_v17 = vmul.f32 1.442695, %v1131_v16 }
 0x3b7   : > { %v1128_v19 = vpop.xlane.xlu1 %1127  ;;  %v654_v30 = vpop.permute.xlu0 %653 }
 0x3b8   : > { %2020 = vpow2.f32 %v1137_v17  ;;  %v1132_v21 = vsub.f32 %v1116_v3, %v1128_v19 }
 0x3ba   : > { %v2538_v22 = vpop.eup %2016  ;;  %v1139_v13 = vmul.f32 1.442695, %v1132_v21 }
 0x3bb   : > { %v1141_v11 = vsel %vm801_vm2, %v2538_v22, 0.0  ;;  %v656_v31 = vpop.permute.xlu1 %655 }
 0x3bc   : > { %2022 = vpow2.f32 %v1139_v13  ;;  %1142 = vadd.xlane.f32.xlu0 %v1141_v11  ;;  %v1607_v11 = vld [vmem:[#allocation7 + $0x8] sm:$0xff] }
 0x3be   : > { %v2019_v23 = vpop.eup %2018 }
 0x3bf   : > { %v1144_v24 = vsel %vm801_vm2, %v2019_v23, 0.0 }
 0x3c0   : > { %1145 = vadd.xlane.f32.xlu1 %v1144_v24 }
 0x3c2   : > { %v2543_v26 = vpop.eup %2020 }
 0x3c3   : > { %v1147_v27 = vsel %vm801_vm2, %v2543_v26, 0.0 }
 0x3c4   : > { %1148 = vadd.xlane.f32.xlu0 %v1147_v27 }
 0x3c6   : > { %v2547_v28 = vpop.eup %2022 }
 0x3c7   : > { %v1150_v29 = vsel %vm801_vm2, %v2547_v28, 0.0 }
 0x3c8   : > { %1151 = vadd.xlane.f32.xlu1 %v1150_v29 }
 0x3d9   : > { %657 = vrot.lane.b32.xlu1 %v2447_v15, %s2204_s7 }
 0x3da   : > { %659 = vrot.lane.b32.xlu0 %v2445_v14, %s2204_s7  ;;  %s2124_s7 = scalar_lea.vmem %s2123_s28, 256 }
 0x3db   : > { %p2126_p9 = scmp.lt.s32.totalorder %s2124_s7, %s2118_s22 }
 0x3dd   : > { %p2127_p12 = por %p2126_p9, %p2125_p7 }
 0x3df   : > { %p2128_p2 = pnand %p2127_p12, %p2121_p3 }
 0x449   : > { %v1143_v32 = vpop.xlane.xlu0 %1142 }
 0x44a   : > { %2024 = vrcp.f32 %v1143_v32 }
 0x44d   : > { %v1146_v34 = vpop.xlane.xlu1 %1145 }
 0x44e   : > { %2026 = vrcp.f32 %v1146_v34 }
 0x451   : > { %v1149_v35 = vpop.xlane.xlu0 %1148 }
 0x452   : > { %2028 = vrcp.f32 %v1149_v35 }
 0x454   : > { %v2025_v61 = vpop.eup %2024 }
 0x455   : > { %v660_v36 = vpop.permute.xlu0 %659  ;;  %v1152_v37 = vpop.xlane.xlu1 %1151  ;;  %v1157_v20 = vmul.f32 %v2025_v61, %v2538_v22  ;;  %v1606_v22 = vld [vmem:[#allocation7] sm:$0xff] }
 0x456   : > { %v681_v38 = vcombine.low %v656_v31, %v660_v36  ;;  %v682_v39 = vcombine.high %v656_v31, %v660_v36  ;;  %2030 = vrcp.f32 %v1152_v37 }
 0x458   : > { %v689_v43 = vrot.slane %v681_v38, %v2459_v25  ;;  %v696_v15 = vrot.slane %v682_v39, %v2459_v25  ;;  %v2027_v3 = vpop.eup %2026 }
 0x459   : > { %v658_v40 = vpop.permute.xlu1 %657  ;;  %v1158_v16 = vmul.f32 %v2027_v3, %v2019_v23  ;;  %v1929_v23 = vpack.c.bf16 %v1607_v11, %v1606_v22 }
 0x45a   : > { %v665_v41 = vcombine.low %v654_v30, %v658_v40  ;;  %v666_v42 = vcombine.high %v654_v30, %v658_v40 }
 0x45c   : > { %v673_v44 = vrot.slane %v665_v41, %v2459_v25  ;;  %v680_v14 = vrot.slane %v666_v42, %v2459_v25  ;;  %v2029_v6 = vpop.eup %2028 }
 0x45d   : > { %v1159_v21 = vmul.f32 %v2029_v6, %v2543_v26 }
 0x45e   : > { %v697_v45 = vcombine.low %v673_v44, %v689_v43  ;;  %v698_v46 = vcombine.high %v673_v44, %v689_v43  ;;  %v713_v47 = vcombine.low %v680_v14, %v696_v15  ;;  %v714_v48 = vcombine.high %v680_v14, %v696_v15  ;;  %v1608_v15 = vld [vmem:[#allocation7 + $0x10] sm:$0xff]  ;;  %v1609_v44 = vld [vmem:[#allocation7 + $0x18] sm:$0xff] }
 0x460   : > { %v705_v49 = vrot.slane %v697_v45, %v2470_v33  ;;  %v712_v50 = vrot.slane %v698_v46, %v2470_v33  ;;  %v721_v51 = vrot.slane %v713_v47, %v2470_v33  ;;  %v728_v52 = vrot.slane %v714_v48, %v2470_v33  ;;  %v2031_v12 = vpop.eup %2030 }
 0x461   : > { %v1160_v13 = vmul.f32 %v2031_v12, %v2547_v28  ;;  %v1932_v48 = vpack.c.bf16 %v1609_v44, %v1608_v15 }
 0x462   : > { %v733_v53 = vcombine.low %v705_v49, %v712_v50  ;;  %v1812_v54 = vcombine.high %v705_v49, %v712_v50  ;;  %v749_v55 = vcombine.low %v721_v51, %v728_v52  ;;  %v1813_v56 = vcombine.high %v721_v51, %v728_v52 }
 0x464   : > { %v740_v57 = vrot.slane %v733_v53, %v2459_v25  ;;  %v748_v58 = vrot.slane %v1812_v54, %v2459_v25  ;;  %v756_v59 = vrot.slane %v749_v55, %v2459_v25  ;;  %v764_v60 = vrot.slane %v1813_v56, %v2459_v25 }
 0x466   : > { %v765_v18 = vcombine.low %v740_v57, %v748_v58  ;;  %v781_v62 = vcombine.low %v756_v59, %v764_v60  ;;  %v766_v63 = vcombine.high %v740_v57, %v748_v58  ;;  %v782_v2 = vcombine.high %v756_v59, %v764_v60 }
 0x468   : > { %v773_v4 = vrot.slane %v765_v18, %v2470_v33  ;;  %v789_v5 = vrot.slane %v781_v62, %v2470_v33  ;;  %v780_v7 = vrot.slane %v766_v63, %v2470_v33  ;;  %v796_v8 = vrot.slane %v782_v2, %v2470_v33 }
 0x46a   : > { %v797_v9 = vcombine.low %v773_v4, %v789_v5  ;;  %v798_v10 = vcombine.high %v773_v4, %v789_v5  ;;  %v799_v17 = vcombine.low %v780_v7, %v796_v8  ;;  %v800_v19 = vcombine.high %v780_v7, %v796_v8 }
 0x46c   : > { %1892 = vmatpush3.msra.mxu0 %v797_v9  ;;  %1897 = vmatpush3.msra.mxu1 %v798_v10  ;;  %v1828_v10 = vld [vmem:[%s2664_s4] ss:$0 sm:$0xff] }
 0x46d   : > { %1894 = vmatmul.mubr.msk.f32.vlgmr.msra.gmra.mrb[2].mxu0 %vm801_vm2, %v1157_v20  ;;  %1899 = vmatmul.mubr.msk.f32.vlgmr.msra.gmra.mrb[8].mxu1 %vm801_vm2, %v1158_v16 }
 0x46e   : > { %1901 = vmatprep.subr.mxu0 %v2197_v1  ;;  %1906 = vmatprep.subr.mxu1 %v2197_v1 }
 0x46f   : > { %1902 = vmatpush3.msra.mxu0 %v799_v17  ;;  %1907 = vmatpush3.msra.mxu1 %v800_v19 }
 0x470   : > { %1903 = vmatprep.mubr.msk.f32.mxu0 %vm2196_vm0, %v2197_v1  ;;  %1908 = vmatprep.mubr.msk.f32.mxu1 %vm2196_vm0, %v2197_v1 }
 0x471   : > { %1904 = vmatmul.mubr.msk.f32.vlgmr.msra.gmra.mrb[4].mxu0 %vm801_vm2, %v1159_v21  ;;  %1909 = vmatmul.mubr.msk.f32.vlgmr.msra.gmra.mrb[10].mxu1 %vm801_vm2, %v1160_v13 }
 0x472   : > { %1928 = vmatprep.subr.bf16.mxu0 %v2195_v0  ;;  %1919 = vmatprep.mubr.msk.f32.mxu0 %vm2196_vm0, %v2197_v1 }
 0x473   : > { %1930 = vmatpush3.bf16.msra.mxu0 %v1929_v23 }
 0x474   : > { %1931 = vmatprep.subr.bf16.mxu0 %v2195_v0 }
 0x477   : > { %1933 = vmatpush3.bf16.msra.mxu0 %v1932_v48 }
 0x540   : > { %v1230_v24 = vpop.f32.mrb[2].mxu0  ;;  %v1303_v26 = vpop.f32.mrb[8].mxu1 }
 0x541   : > { %v1895_v27 = vpop.f32.mrb[3].mxu0  ;;  %v1900_v28 = vpop.f32.mrb[9].mxu1 }
 0x544   : > { %v1376_v29 = vpop.f32.mrb[4].mxu0  ;;  %v1449_v30 = vpop.f32.mrb[10].mxu1 }
 0x545   : > { %v1453_v31 = vcombine.low %v1230_v24, %v1376_v29  ;;  %v1454_v32 = vcombine.high %v1230_v24, %v1376_v29  ;;  %v1469_v34 = vcombine.low %v1303_v26, %v1449_v30  ;;  %v1470_v35 = vcombine.high %v1303_v26, %v1449_v30  ;;  %v1905_v36 = vpop.f32.mrb[5].mxu0  ;;  %v1910_v37 = vpop.f32.mrb[11].mxu1 }
 0x547   : > { %v1461_v1 = vrot.slane %v1453_v31, %v2459_v25  ;;  %v1468_v38 = vrot.slane %v1454_v32, %v2459_v25  ;;  %v1477_v39 = vrot.slane %v1469_v34, %v2459_v25  ;;  %v1484_v0 = vrot.slane %v1470_v35, %v2459_v25 }
 0x549   : > { %v1485_v40 = vcombine.low %v1461_v1, %v1477_v39  ;;  %v1486_v41 = vcombine.high %v1461_v1, %v1477_v39  ;;  %v1501_v42 = vcombine.low %v1468_v38, %v1484_v0  ;;  %v1502_v43 = vcombine.high %v1468_v38, %v1484_v0 }
 0x54b   : > { %v1493_v14 = vrot.slane %v1485_v40, %v2470_v33  ;;  %v1500_v45 = vrot.slane %v1486_v41, %v2470_v33  ;;  %v1509_v46 = vrot.slane %v1501_v42, %v2470_v33  ;;  %v1516_v47 = vrot.slane %v1502_v43, %v2470_v33 }
 0x54d   : > { %v1521_v49 = vcombine.low %v1493_v14, %v1500_v45  ;;  %v1826_v50 = vcombine.high %v1493_v14, %v1500_v45  ;;  %v1537_v51 = vcombine.low %v1509_v46, %v1516_v47  ;;  %v1827_v52 = vcombine.high %v1509_v46, %v1516_v47 }
 0x54f   : > { %v1528_v53 = vrot.slane %v1521_v49, %v2459_v25  ;;  %v1536_v54 = vrot.slane %v1826_v50, %v2459_v25  ;;  %v1544_v55 = vrot.slane %v1537_v51, %v2459_v25  ;;  %v1552_v56 = vrot.slane %v1827_v52, %v2459_v25 }
 0x551   : > { %v1554_v57 = vcombine.high %v1528_v53, %v1536_v54  ;;  %v1570_v58 = vcombine.high %v1544_v55, %v1552_v56  ;;  %v1553_v59 = vcombine.low %v1528_v53, %v1536_v54  ;;  %v1569_v60 = vcombine.low %v1544_v55, %v1552_v56 }
 0x553   : > { %v1568_v61 = vrot.slane %v1554_v57, %v2470_v33  ;;  %v1584_v18 = vrot.slane %v1570_v58, %v2470_v33  ;;  %v1561_v62 = vrot.slane %v1553_v59, %v2470_v33  ;;  %v1577_v63 = vrot.slane %v1569_v60, %v2470_v33 }
 0x555   : > { %v1587_v2 = vcombine.low %v1568_v61, %v1584_v18  ;;  %v1586_v3 = vcombine.high %v1561_v62, %v1577_v63  ;;  %v1588_v4 = vcombine.high %v1568_v61, %v1584_v18  ;;  %v1585_v5 = vcombine.low %v1561_v62, %v1577_v63 }
 0x557   : > { %1594 = vrot.lane.b32.xlu0 %v1587_v2, %s2205_s6  ;;  %1590 = vrot.lane.b32.xlu1 %v1586_v3, %s2206_s30 }
 0x55b   : > { %1598 = vrot.lane.b32.xlu1 %v1588_v4, %s2207_s15 }
 0x5c9   : > { %v1591_v25 = vpop.permute.xlu1 %1590  ;;  %v1595_v6 = vpop.permute.xlu0 %1594 }
 0x5ca   : > { %v1601_v7 = vsel %vm801_vm2, %v1585_v5, %v1591_v25 }
 0x5cb   : > { %v1603_v8 = vsel %vm1602_vm4, %v1601_v7, %v1595_v6 }
 0x5cd   : > { %v1599_v33 = vpop.permute.xlu1 %1598 }
 0x5ce   : > { %v1605_v9 = vsel %vm1604_vm5, %v1603_v8, %v1599_v33 }
 0x5cf   : > { %1920 = vmatmul.mubr.msk.f32.vlgmr.msra.gmra.mrb[6].mxu0 %vm281_vm1, %v1605_v9 }
 0x6a2   : > { %v1686_v12 = vpop.f32.mrb[6].mxu0 }
 0x6a3   : > { %v1687_v20 = vadd.f32 %v1828_v10, %v1686_v12  ;;  %v1921_v16 = vpop.f32.mrb[7].mxu0 }
 0x6a5   : > { %1690 = vst.msk [vmem:[%s268_s17] sm:$0xff] %vm281_vm1, %v1687_v20 }
 0x6a6   : > { %2131 = shalt.err (!%p2128_p2)
}
 0x6a7   : > { %s2132_s12 = scalar_lea.hbm %s2615_s10, 128  ;;  %s2136_s15 = scalar_lea.hbm %s2665_s5, 256 }
 0x6a8   : > { %p2133_p13 = scmp.ne.s32.totalorder %s2615_s10, %s2132_s12  ;;  %p2137_p4 = scmp.lt.u32.totalorder %s2615_s10, %s2665_s5 }
 0x6a9   : > { %p2138_p5 = scmp.lt.u32.totalorder %s2136_s15, %s2132_s12  ;;  %p2140_p11 = scmp.lt.u32.totalorder %s2132_s12, %s2615_s10 }
 0x6aa   : > { %p2134_p6 = pnand %p2133_p13, %p2679_p0 }
 0x6ab   : > { %p2139_p8 = por %p2138_p5, %p2137_p4 }
 0x6ac   : > { %p2135_p10 = pneg %p2134_p6 }
 0x6ad   : > { %p2141_p1 = por %p2140_p11, %p2139_p8 }
 0x6af   : > { %p2142_p3 = pnand %p2141_p1, %p2135_p10 }
 0x6b1   : > { %2145 = shalt.err (!%p2142_p3)
}
 0x6b2   : > { %1944 = dma.vmem_to_hbm [thread:$0]  (%p2679_p0), %s2617_s24, 128, %s2615_s10, %s1692_s11  }
 0x6b3 PF: > { %s1717_s29 = sand.u32 1, %s2176_s18   ;;  %p2680_p7 = scmp.ne.s32.totalorder %s2670_s25, 0 }
 0x6b4   : > { %p2681_p9 = scmp.ge.s32.totalorder %s2188_s21, 2  ;;  %s1718_s17 = scalar_lea.sflag [#allocation4], %s1717_s29 }
 0x6b6   : > { %p1958_p12 = pnand %p2681_p9, %p2680_p7 }
 0x6b8   : > { %2171 = dma.done.wait (!%p1958_p12), %s1718_s17, 128  }
 0x6b9   : > { %2173 = vsyncadd (!%p1958_p12), %s1718_s17, 4294967168  ;;  %p19_p2 = scmp.ge.s32.totalorder %s2349_s14, 4   ;;  %s2682_s18 = smov %s2180_s19 }
 0x6ba   : > { %s2683_s19 = smov %s2184_s20  ;;  %s2684_s20 = smov %s2365_s27 }
 0x6bb   : > { %s2685_s21 = smov %s2349_s14  ;;  %21 = sbr.rel (!%p19_p2) target bundleno = 6 (0x6), region = 93 }
 0x6c2   :  { %1723 = vsyncpa [#allocation3], 1 }
 0x6c3   :  { %1725 = vsyncpa [#allocation3 + $0x1], 1 }
 0x6c4   :  { %1726 = vsyncpa [#allocation6], 1 }
 0x6c5   :  { %1727 = vsyncpa [#allocation4], 1 }
 0x6c6   :  { %1729 = vsyncpa [#allocation4 + $0x1], 1 }

</bundles_post_ra>
